<compile_context>
chip_gen: v7x
topology: tpu7x:2x2x1
jax: 0.10.0
libtpu: 0.0.40
codegen_flags: <defaults>
</compile_context>

<pallas_src>
import functools

import numpy as np
import jax
import jax.numpy as jnp
from jax import lax
from jax.experimental import pallas as pl
from jax.experimental.pallas import tpu as pltpu


def _round_up(x, m):
    return ((x + m - 1) // m) * m


# --------------------------------------------------------------------------
# Pallas kernel
# --------------------------------------------------------------------------
def _mll_kernel(shape, offsets, n_total, x_ref, t_ref, m_ref, out_ref):
    """shape: python tuple (s0,...,s_{K-1}); offsets: column offset of each
    marginal group inside the fused indicator matrix; n_total: global N."""
    K = len(shape)
    TN = x_ref.shape[0]

    # out_ref is VMEM-resident across the whole grid (constant out index_map,
    # "arbitrary" semantics): use it directly as the loss accumulator.
    @pl.when(pl.program_id(0) == 0)
    def _init():
        out_ref[...] = jnp.zeros_like(out_ref)

    # --- un-normalized softmax numerators (f32 elementwise: v5e-safe) ------
    x = x_ref[...].astype(jnp.float32)                         # (TN, D)
    xm = jnp.max(x, axis=-1, keepdims=True)
    e = jnp.exp(x - xm)                                        # (TN, D), <= 1

    # --- all marginals in ONE native bf16 MXU matmul, f32 accumulation -----
    # indicator entries are exact 0/1 in bf16; e is cast once at the dot input.
    marg = jnp.dot(e.astype(jnp.bfloat16), m_ref[...],
                   preferred_element_type=jnp.float32)         # (TN, C_pad)
    C_pad = marg.shape[1]

    col = lax.broadcasted_iota(jnp.int32, (TN, C_pad), 1)      # (TN, C_pad)
    t0 = t_ref[:, 0:1]                                         # (TN, 1) int32

    # log Z from the axis-0 marginal group (cols [0, s0)) — avoids a second
    # TN x D cross-lane reduction; group-0 columns sum exactly to sum(e).
    z = jnp.sum(jnp.where(col < shape[0], marg, 0.0), axis=-1, keepdims=True)

    # per-row loss = log em0 - sum_{i>=1} log em_i + (K - 2) * log Z
    if K != 2:  # static: skip the dead multiply when the coefficient is 0
        per_row = jnp.float32(K - 2) * jnp.log(z)
    else:
        per_row = jnp.zeros((TN, 1), jnp.float32)

    for i in range(K):
        if i == 0:
            label = offsets[0] + t0
            sgn = 1.0
        else:
            label = offsets[i] + shape[i] * t0 + t_ref[:, i:i + 1]
            sgn = -1.0
        # gather-then-log: select the single label column, one log per row.
        picked = jnp.sum(jnp.where(col == label, marg, 0.0),
                         axis=-1, keepdims=True)               # (TN, 1)
        per_row = per_row + sgn * jnp.log(picked)

    # --- mask ragged last tile against the GLOBAL batch size ---------------
    # jnp.where is a select: -inf/NaN from padded rows is dropped, not propagated.
    row = pl.program_id(0) * TN + lax.broadcasted_iota(jnp.int32, (TN, 1), 0)
    per_row = jnp.where(row < n_total, per_row, 0.0)

    out_ref[...] += jnp.sum(per_row)                           # accumulate in VMEM


# --------------------------------------------------------------------------
# Fused indicator matrix for all marginalizations (built host-side, exact 0/1)
# --------------------------------------------------------------------------
def _build_combined_indicator(shape):
    """One (D, C_pad) bf16 0/1 matrix whose column-slices give marg0 and every
    joint marginal (axis 0, axis i). Returns (matrix, per-axis col offsets, C_pad)."""
    K = len(shape)
    D = int(np.prod(shape))
    grids = np.stack(
        np.meshgrid(*[np.arange(s) for s in shape], indexing="ij"), axis=-1
    ).reshape(D, K)                                            # (D, K) index table
    A = shape[0]

    cols = [grids[:, 0:1] == np.arange(A)[None, :]]            # (D, A)
    sizes = [A]
    for i in range(1, K):
        flat = grids[:, 0] * shape[i] + grids[:, i]
        cols.append(flat[:, None] == np.arange(A * shape[i])[None, :])
        sizes.append(A * shape[i])

    M = np.concatenate(cols, axis=1).astype(np.float32)        # exact 0/1
    C_total = int(sum(sizes))
    C_pad = max(128, _round_up(C_total, 128))                  # lane-dense matmul out
    if C_pad > C_total:
        M = np.pad(M, ((0, 0), (0, C_pad - C_total)))

    offsets = [0]
    for s in sizes[:-1]:
        offsets.append(offsets[-1] + int(s))
    return jnp.asarray(M, dtype=jnp.bfloat16), offsets, C_pad  # 0/1 exact in bf16


def _vmem_capacity_bytes():
    """Real per-core VMEM capacity; conservative 64 MiB fallback (v7x-sized)."""
    try:
        cap = int(pltpu.get_tpu_info().vmem_capacity_bytes)
        if cap > 0:
            return cap
    except Exception:
        pass
    return 64 * 2 ** 20


def mll_pallas(logits, target, multi_label_shape):
    shape = tuple(int(s) for s in multi_label_shape)
    K = len(shape)
    N, D = logits.shape
    assert D == int(np.prod(shape))
    assert target.shape[0] == N and target.shape[1] == K

    M, offsets, C_pad = _build_combined_indicator(shape)
    target = target.astype(jnp.int32)
    itemsize = jnp.dtype(logits.dtype).itemsize

    # --- per-generation VMEM budget: ~75% of real capacity -----------------
    # (96 MiB on v5e/v6e's 128 MiB, 48 MiB on v7x's 64 MiB — leaves headroom
    # for compiler-internal scratch and the output pipeline.)
    vmem_budget = int(0.75 * _vmem_capacity_bytes())

    # --- VMEM cost model (counts lane padding + double buffers) ------------
    D_lane = _round_up(D, 128)
    per_row_bytes = (
        2 * D_lane * itemsize      # logits tile, double-buffered, lane-padded
        + 2 * 128 * 4              # (TN, K) int32 target tile -> 128 lanes, 2 bufs
        + 4 * D_lane * 4           # f32 temporaries along D (x, x - xm, e, cast)
        + 4 * C_pad * 4            # marg, column iota, gather temporaries
    )
    fixed_bytes = (
        D * C_pad * 2              # resident bf16 indicator, single-buffered
        + 2 * 8 * 128 * 4          # (8,128) f32 output/accumulator tile
        + (1 << 20)                # misc compiler scratch slack
    )
    if fixed_bytes + 8 * per_row_bytes > vmem_budget:
        # TODO(synk): column-tile the fused indicator over a second grid axis
        # (or switch to segmented VPU adds) when D*C_pad no longer fits VMEM —
        # matters first on v7x's 64 MiB.
        raise NotImplementedError(
            "fused indicator matrix does not fit the VMEM budget for "
            f"multi_label_shape={shape}")

    # --- batch tile: VMEM-feasible, ~1-4 MiB of logits per step, [256, 4096]
    tn_vmem = (vmem_budget - fixed_bytes) // per_row_bytes
    tn_stream = (4 << 20) // max(1, D * itemsize)          # ~4 MiB of logits/tile
    TN = min(tn_vmem, 4096)
    TN = min(TN, max(256, tn_stream))                      # keep MXU side full
    TN = max(8, (TN // 8) * 8)                             # sublane multiple
    TN = min(TN, _round_up(N, 8))                          # don't exceed the batch
    num_blocks = pl.cdiv(N, TN)

    kernel = functools.partial(_mll_kernel, shape, offsets, N)
    out = pl.pallas_call(
        kernel,
        out_shape=jax.ShapeDtypeStruct((8, 128), jnp.float32),
        grid=(num_blocks,),
        in_specs=[
            pl.BlockSpec((TN, D), lambda n: (n, 0)),       # logits tile (native dtype)
            pl.BlockSpec((TN, K), lambda n: (n, 0)),       # target tile
            # fused bf16 indicator: whole array resident in VMEM, single buffer
            pl.BlockSpec(memory_space=pltpu.MemorySpace.VMEM),
        ],
        # constant output index across the grid -> VMEM-resident accumulator,
        # one HBM writeback at the end ("arbitrary" semantics required).
        out_specs=pl.BlockSpec((8, 128), lambda n: (0, 0)),
        compiler_params=pltpu.CompilerParams(
            dimension_semantics=("arbitrary",),
            vmem_limit_bytes=vmem_budget,
        ),
    )(logits, target, M)

    # tiny epilogue: every element of the tile holds the global sum.
    return out[0, 0] / N


# --------------------------------------------------------------------------
# Pure-JAX reference (mirrors the PyTorch module exactly)
# --------------------------------------------------------------------------
def mll_ref(logits, target, multi_label_shape):
    shape = tuple(int(s) for s in multi_label_shape)
    K = len(shape)
    p = jax.nn.softmax(logits.astype(jnp.float32), axis=1).reshape((-1,) + shape)
    N = p.shape[0]

    marg0 = p.reshape(N, shape[0], -1).sum(-1)
    loss0 = -jnp.mean(jnp.log(marg0[jnp.arange(N), target[:, 0]]))
    tot = -1.0 * loss0
    for i in range(1, K):
        axes = tuple(j + 1 for j in range(K) if j not in (0, i))
        joint = p.sum(axis=axes).reshape(N, -1)
        lbl = shape[i] * target[:, 0] + target[:, i]
        tot = tot + (-jnp.mean(jnp.log(joint[jnp.arange(N), lbl])))
    return tot


# --------------------------------------------------------------------------
if __name__ == "__main__":
    multi_label_shape = (4, 4, 2)          # K = 3 label axes, D = 32 classes
    N = 8
    D = int(np.prod(multi_label_shape))

    key = jax.random.PRNGKey(0)
    k_logits, *k_t = jax.random.split(key, 1 + len(multi_label_shape))

    logits = jax.random.normal(k_logits, (N, D), dtype=jnp.float32)
    target = jnp.stack(
        [
            jax.random.randint(k_t[i], (N,), 0, multi_label_shape[i], dtype=jnp.int32)
            for i in range(len(multi_label_shape))
        ],
        axis=1,
    )                                       # (N, K) int32

    loss = mll_pallas(logits, target, multi_label_shape)
    loss = jax.block_until_ready(loss)

    ref = mll_ref(logits, target, multi_label_shape)
    # bf16 MXU feed gives ~1e-3-level relative error in the marginals; real
    # bugs (wrong offset/sign) move the loss by O(0.1-1), so 2e-2 still catches them.
    assert jnp.allclose(loss, ref, atol=2e-2, rtol=2e-2), (loss, ref)

    print("KERNEL_OK")
</pallas_src>

<mosaic_0001>
module attributes {stable_mosaic.version = 11 : i64} {
  func.func @_mll_kernel(%arg0: i32, %arg1: memref<8x32xf32, #tpu.memory_space<vmem>>, %arg2: memref<8x3xi32, #tpu.memory_space<vmem>>, %arg3: memref<32x128xbf16, #tpu.memory_space<vmem>>, %arg4: memref<8x128xf32, #tpu.memory_space<vmem>>) attributes {dimension_semantics = [#tpu.dimension_semantics<arbitrary>], iteration_bounds = array<i64: 1>, scalar_prefetch = 0 : i64, scratch_operands = 0 : i64, tpu.core_type = #tpu.core_type<tc>, window_params = [{transform_indices = @transform_0, window_bounds = array<i64: 8, 32>}, {transform_indices = @transform_1, window_bounds = array<i64: 8, 3>}, {pipeline_mode = #tpu.pipeline_mode<synchronous>, transform_indices = @transform_2, window_bounds = array<i64: 32, 128>}, {pipeline_mode = #tpu.pipeline_mode<synchronous>, transform_indices = @transform_3, window_bounds = array<i64: 8, 128>}]} {
    %c0_i32 = arith.constant 0 : i32
    %0 = arith.cmpi eq, %arg0, %c0_i32 : i32
    %1 = arith.extui %0 : i1 to i32
    %c0_i32_0 = arith.constant 0 : i32
    %2 = arith.cmpi ne, %1, %c0_i32_0 : i32
    scf.if %2 {
      %cst_31 = arith.constant 0.000000e+00 : f32
      %83 = vector.broadcast %cst_31 : f32 to vector<8x128xf32>
      %c0_32 = arith.constant 0 : index
      %c0_33 = arith.constant 0 : index
      %84 = vector.load %arg4[%c0_32, %c0_33] : memref<8x128xf32, #tpu.memory_space<vmem>>, vector<8x128xf32>
      tpu.vector_store %arg4[%c0_32, %c0_33], %83 {strides = array<i32>} : memref<8x128xf32, #tpu.memory_space<vmem>>, vector<8x128xf32>,
    } else {
    }
    %c0 = arith.constant 0 : index
    %c0_1 = arith.constant 0 : index
    %3 = vector.load %arg1[%c0, %c0_1] : memref<8x32xf32, #tpu.memory_space<vmem>>, vector<8x32xf32>
    %cst = arith.constant dense<0xFF800000> : vector<8xf32>
    %4 = vector.multi_reduction <maximumf>, %3, %cst [1] : vector<8x32xf32> to vector<8xf32>
    %5 = vector.shape_cast %4 : vector<8xf32> to vector<8x1xf32>
    %6 = vector.broadcast %5 : vector<8x1xf32> to vector<8x32xf32>
    %7 = arith.subf %3, %6 : vector<8x32xf32>
    %8 = math.exp %7 : vector<8x32xf32>
    %9 = arith.truncf %8 : vector<8x32xf32> to vector<8x32xbf16>
    %c0_2 = arith.constant 0 : index
    %c0_3 = arith.constant 0 : index
    %10 = vector.load %arg3[%c0_2, %c0_3] : memref<32x128xbf16, #tpu.memory_space<vmem>>, vector<32x128xbf16>
    %cst_4 = arith.constant dense<0.000000e+00> : vector<8x128xf32>
    %11 = tpu.matmul %9, %10, %cst_4 {dimension_numbers = #tpu.dot_dimension_numbers<[1], [0], [0], [1], [0, 0, 1, 1], [], []>} : vector<8x32xbf16>, vector<32x128xbf16>, vector<8x128xf32> -> vector<8x128xf32>
    %12 = tpu.iota {dimensions = array<i32: 1>} : vector<8x128xi32>
    %c0_5 = arith.constant 0 : index
    %c0_6 = arith.constant 0 : index
    %13 = vector.load %arg2[%c0_5, %c0_6] : memref<8x3xi32, #tpu.memory_space<vmem>>, vector<8x1xi32>
    %c4_i32 = arith.constant 4 : i32
    %14 = vector.broadcast %c4_i32 : i32 to vector<8x128xi32>
    %15 = arith.cmpi slt, %12, %14 : vector<8x128xi32>
    %cst_7 = arith.constant 0.000000e+00 : f32
    %16 = vector.broadcast %cst_7 : f32 to vector<8x128xf32>
    %17 = arith.select %15, %11, %16 : vector<8x128xi1>, vector<8x128xf32>
    %cst_8 = arith.constant dense<0.000000e+00> : vector<8xf32>
    %18 = vector.multi_reduction <add>, %17, %cst_8 [1] : vector<8x128xf32> to vector<8xf32>
    %19 = vector.shape_cast %18 : vector<8xf32> to vector<8x1xf32>
    %20 = math.log %19 : vector<8x1xf32>
    %cst_9 = arith.constant 1.000000e+00 : f32
    %21 = vector.broadcast %cst_9 : f32 to vector<8x1xf32>
    %22 = arith.mulf %21, %20 : vector<8x1xf32>
    %c0_i32_10 = arith.constant 0 : i32
    %23 = vector.broadcast %c0_i32_10 : i32 to vector<8x1xi32>
    %24 = arith.addi %23, %13 : vector<8x1xi32>
    %25 = vector.broadcast %24 : vector<8x1xi32> to vector<8x128xi32>
    %26 = arith.cmpi eq, %12, %25 : vector<8x128xi32>
    %cst_11 = arith.constant 0.000000e+00 : f32
    %27 = vector.broadcast %cst_11 : f32 to vector<8x128xf32>
    %28 = arith.select %26, %11, %27 : vector<8x128xi1>, vector<8x128xf32>
    %cst_12 = arith.constant dense<0.000000e+00> : vector<8xf32>
    %29 = vector.multi_reduction <add>, %28, %cst_12 [1] : vector<8x128xf32> to vector<8xf32>
    %30 = vector.shape_cast %29 : vector<8xf32> to vector<8x1xf32>
    %31 = math.log %30 : vector<8x1xf32>
    %cst_13 = arith.constant 1.000000e+00 : f32
    %32 = vector.broadcast %cst_13 : f32 to vector<8x1xf32>
    %33 = arith.mulf %32, %31 : vector<8x1xf32>
    %34 = arith.addf %22, %33 : vector<8x1xf32>
    %c4_i32_14 = arith.constant 4 : i32
    %35 = vector.broadcast %c4_i32_14 : i32 to vector<8x1xi32>
    %36 = arith.muli %35, %13 : vector<8x1xi32>
    %c4_i32_15 = arith.constant 4 : i32
    %37 = vector.broadcast %c4_i32_15 : i32 to vector<8x1xi32>
    %38 = arith.addi %37, %36 : vector<8x1xi32>
    %c0_16 = arith.constant 0 : index
    %c1 = arith.constant 1 : index
    %39 = vector.load %arg2[%c0_16, %c1] : memref<8x3xi32, #tpu.memory_space<vmem>>, vector<8x1xi32>
    %40 = arith.addi %38, %39 : vector<8x1xi32>
    %41 = vector.broadcast %40 : vector<8x1xi32> to vector<8x128xi32>
    %42 = arith.cmpi eq, %12, %41 : vector<8x128xi32>
    %cst_17 = arith.constant 0.000000e+00 : f32
    %43 = vector.broadcast %cst_17 : f32 to vector<8x128xf32>
    %44 = arith.select %42, %11, %43 : vector<8x128xi1>, vector<8x128xf32>
    %cst_18 = arith.constant dense<0.000000e+00> : vector<8xf32>
    %45 = vector.multi_reduction <add>, %44, %cst_18 [1] : vector<8x128xf32> to vector<8xf32>
    %46 = vector.shape_cast %45 : vector<8xf32> to vector<8x1xf32>
    %47 = math.log %46 : vector<8x1xf32>
    %cst_19 = arith.constant -1.000000e+00 : f32
    %48 = vector.broadcast %cst_19 : f32 to vector<8x1xf32>
    %49 = arith.mulf %48, %47 : vector<8x1xf32>
    %50 = arith.addf %34, %49 : vector<8x1xf32>
    %c2_i32 = arith.constant 2 : i32
    %51 = vector.broadcast %c2_i32 : i32 to vector<8x1xi32>
    %52 = arith.muli %51, %13 : vector<8x1xi32>
    %c20_i32 = arith.constant 20 : i32
    %53 = vector.broadcast %c20_i32 : i32 to vector<8x1xi32>
    %54 = arith.addi %53, %52 : vector<8x1xi32>
    %c0_20 = arith.constant 0 : index
    %c2 = arith.constant 2 : index
    %55 = vector.load %arg2[%c0_20, %c2] : memref<8x3xi32, #tpu.memory_space<vmem>>, vector<8x1xi32>
    %56 = arith.addi %54, %55 : vector<8x1xi32>
    %57 = vector.broadcast %56 : vector<8x1xi32> to vector<8x128xi32>
    %58 = arith.cmpi eq, %12, %57 : vector<8x128xi32>
    %cst_21 = arith.constant 0.000000e+00 : f32
    %59 = vector.broadcast %cst_21 : f32 to vector<8x128xf32>
    %60 = arith.select %58, %11, %59 : vector<8x128xi1>, vector<8x128xf32>
    %cst_22 = arith.constant dense<0.000000e+00> : vector<8xf32>
    %61 = vector.multi_reduction <add>, %60, %cst_22 [1] : vector<8x128xf32> to vector<8xf32>
    %62 = vector.shape_cast %61 : vector<8xf32> to vector<8x1xf32>
    %63 = math.log %62 : vector<8x1xf32>
    %cst_23 = arith.constant -1.000000e+00 : f32
    %64 = vector.broadcast %cst_23 : f32 to vector<8x1xf32>
    %65 = arith.mulf %64, %63 : vector<8x1xf32>
    %66 = arith.addf %50, %65 : vector<8x1xf32>
    %c8_i32 = arith.constant 8 : i32
    %67 = arith.muli %arg0, %c8_i32 : i32
    %68 = tpu.iota {dimensions = array<i32: 0>} : vector<8x1xi32>
    %69 = vector.broadcast %67 : i32 to vector<8x1xi32>
    %70 = arith.addi %69, %68 : vector<8x1xi32>
    %c8_i32_24 = arith.constant 8 : i32
    %71 = vector.broadcast %c8_i32_24 : i32 to vector<8x1xi32>
    %72 = arith.cmpi slt, %70, %71 : vector<8x1xi32>
    %cst_25 = arith.constant 0.000000e+00 : f32
    %73 = vector.broadcast %cst_25 : f32 to vector<8x1xf32>
    %74 = arith.select %72, %66, %73 : vector<8x1xi1>, vector<8x1xf32>
    %c0_26 = arith.constant 0 : index
    %c0_27 = arith.constant 0 : index
    %75 = vector.load %arg4[%c0_26, %c0_27] : memref<8x128xf32, #tpu.memory_space<vmem>>, vector<8x128xf32>
    %76 = vector.shape_cast %74 : vector<8x1xf32> to vector<1x8x1xf32>
    %cst_28 = arith.constant dense<0.000000e+00> : vector<1xf32>
    %77 = vector.multi_reduction <add>, %76, %cst_28 [1, 2] : vector<1x8x1xf32> to vector<1xf32>
    %78 = vector.shape_cast %77 : vector<1xf32> to vector<1x1x1xf32>
    %79 = vector.extract %78[0, 0, 0] : f32 from vector<1x1x1xf32>
    %80 = vector.broadcast %79 : f32 to vector<8x128xf32>
    %81 = arith.addf %75, %80 : vector<8x128xf32>
    %c0_29 = arith.constant 0 : index
    %c0_30 = arith.constant 0 : index
    %82 = vector.load %arg4[%c0_29, %c0_30] : memref<8x128xf32, #tpu.memory_space<vmem>>, vector<8x128xf32>
    tpu.vector_store %arg4[%c0_29, %c0_30], %81 {strides = array<i32>} : memref<8x128xf32, #tpu.memory_space<vmem>>, vector<8x128xf32>,
    return
  }
  func.func @transform_0(%arg0: i32) -> (i32, i32) {
    %c0_i32 = arith.constant 0 : i32
    %c0_i32_0 = arith.constant 0 : i32
    return %arg0, %c0_i32 : i32, i32
  }
  func.func @transform_1(%arg0: i32) -> (i32, i32) {
    %c0_i32 = arith.constant 0 : i32
    %c0_i32_0 = arith.constant 0 : i32
    return %arg0, %c0_i32 : i32, i32
  }
  func.func @transform_2(%arg0: i32) -> (i32, i32) {
    %c0_i32 = arith.constant 0 : i32
    %c0_i32_0 = arith.constant 0 : i32
    %c0_i32_1 = arith.constant 0 : i32
    return %c0_i32, %c0_i32_0 : i32, i32
  }
  func.func @transform_3(%arg0: i32) -> (i32, i32) {
    %c0_i32 = arith.constant 0 : i32
    %c0_i32_0 = arith.constant 0 : i32
    %c0_i32_1 = arith.constant 0 : i32
    return %c0_i32, %c0_i32_0 : i32, i32
  }
}

</mosaic_0001>

<bundles_post_ra>
// kernel: tpu_custom_call.1
= control target key start
LH: loop header
LB: loop body
LE: loop exit
PB: predicated region body
PF: predicated region fallthrough
CT: control target
= control target key end

     0   :  { %8 = vsyncpa [#allocation3], 0  ;;  %s336_s0 = inlined_call_operand.hbm [shape: f32[8,32], index: 0, kind: input, shape index: {}]   ;;  %s337_s1 = inlined_call_operand.vmem [shape: s32[8,3], index: 1, kind: input, shape index: {}]   ;;  %s338_s2 = inlined_call_operand.vmem [shape: bf16[32,128], index: 2, kind: input, shape index: {}]   ;;  %s339_s3 = inlined_call_operand.hbm [shape: f32[8,128], index: 3, kind: output, shape index: {}]  }
   0x1   :  { %9 = vsyncpa [#allocation4], 0  ;;  %s274_s12 = smov [#allocation2]   ;;  %s226_s16 = scalar_lea.hbm %s336_s0, 128 }
   0x2   :  { %s16_s13 = sshll.u32 %s274_s12, 4  ;;  %p227_p0 = scmp.ne.s32.totalorder %s336_s0, %s226_s16  ;;  %s17_s13 = int_to_ptr.vmem [resolvable:$true] %s16_s13 }
   0x3   :  { %p230_p1 = scmp.lt.u32.totalorder %s226_s16, %s336_s0 }
   0x5   :  { %p232_p2 = pnand %p230_p1, %p227_p0 }
   0x7   :  { %235 = shalt.err (!%p232_p2)
}
   0x8   :  { %s236_s21 = scalar_lea.vmem %s17_s13, 128  ;;  %p241_p4 = scmp.lt.s32.totalorder %s17_s13, %s17_s13 }
   0x9   :  { %p237_p3 = scmp.ne.s32.totalorder %s17_s13, %s236_s21  ;;  %p242_p5 = scmp.lt.s32.totalorder %s236_s21, %s236_s21 }
   0xb   :  { %p243_p6 = por %p242_p5, %p241_p4 }
   0xd   :  { %p244_p7 = pnand %p243_p6, %p237_p3 }
   0xf   :  { %247 = shalt.err (!%p244_p7)
}
  0x10   :  { %19 = dma.hbm_to_vmem [thread:$0]  %s336_s0, 128, %s17_s13, [#allocation3]  }
  0x11   :  { %270 = dma.done.wait [#allocation3], 128  }
  0x12   :  { %271 = vsyncadd [#allocation3], 4294967168  ;;  %vm34_vm0 = vcmask 261120   ;;  %v33_v0 = vld [vmem:[#allocation2] sm:$0xff]  ;;  %s275_s26 = smov 126   ;;  %s276_s27 = smov 127   ;;  %v101_v20 = vlaneseq }
  0x13   :  { %v103_v1 = vld [vmem:[%s337_s1] sm:$0xff]  ;;  %v35_v2 = vsel %vm34_vm0, %v33_v0, -inf  ;;  %v277_v4 = vmov 0.0   ;;  %v215_v5 = vld [vmem:[%s338_s2 + $0x8] sm:$0xff]   ;;  %vm278_vm1 = vmmov 0   ;;  %v279_v6 = vmov 0  }
  0x14   :  { %138 = vrot.lane.b32.xlu1 %v103_v1, %s275_s26  ;;  %36 = vmax.xlane.f32.xlu0 %v35_v2  ;;  %v214_v3 = vld [vmem:[%s338_s2] sm:$0xff]   ;;  %v120_v7 = vmul.u32 4, %v103_v1  ;;  %v136_v8 = vmul.u32 2, %v103_v1  ;;  %v102_v22 = vand.u32 127, %v101_v20  ;;  %vm160_vm6 = vcmask 7168   ;;  %s280_s1 = smov [#allocation5]  }
  0x15   :  { %195 = vmatprep.subr.bf16.mxu0 %v277_v4  ;;  %199 = vmatprep.mubr.msk.bf16.mxu0 %vm278_vm1, %v277_v4  ;;  %s180_s2 = sshll.u32 %s280_s1, 4  ;;  %s181_s2 = int_to_ptr.vmem [resolvable:$true] %s180_s2 }
  0x16   :  { %196 = vmatpush3.bf16.msra.mxu0 %v214_v3  ;;  %212 = vset.pattern.permute.xlu1 %v279_v6  ;;  %v121_v11 = vadd.s32 4, %v120_v7  ;;  %v137_v13 = vadd.s32 20, %v136_v8  ;;  %vm104_vm3 = vcmp.lt.s32.totalorder %v102_v22, 4  ;;  %s248_s5 = scalar_lea.vmem %s181_s2, 128  ;;  %p253_p9 = scmp.lt.s32.totalorder %s181_s2, %s181_s2 }
  0x17   :  { %197 = vmatprep.subr.bf16.mxu0 %v277_v4  ;;  %213 = vset.pattern.permute.xlu0 %v279_v6  ;;  %p249_p8 = scmp.ne.s32.totalorder %s181_s2, %s248_s5  ;;  %p254_p10 = scmp.lt.s32.totalorder %s248_s5, %s248_s5 }
  0x18   :  { %111 = vperm.xlu1 %212, %v103_v1  }
  0x19   :  { %p255_p11 = por %p254_p10, %p253_p9 }
  0x1a   :  { %198 = vmatpush3.bf16.msra.mxu0 %v215_v5 }
  0x1b   :  { %p256_p12 = pnand %p255_p11, %p249_p8 }
  0x2a   :  { %122 = vrot.lane.b32.xlu0 %v103_v1, %s276_s27 }
  0x86   :  { %v139_v15 = vpop.permute.xlu1 %138 }
  0x87   :  { %v140_v17 = vadd.s32 %v139_v15, %v137_v13 }
  0x97   :  { %v112_v21 = vpop.permute.xlu1 %111 }
  0x98   :  { %vm113_vm2 = vcmp.eq.s32.totalorder %v102_v22, %v112_v21 }
  0xa1   :  { %v37_v9 = vpop.xlane.xlu0 %36 }
  0xa2   :  { %v38_v10 = vsub.f32 %v33_v0, %v37_v9 }
  0xa4   :  { %v39_v12 = vmul.f32 1.442695, %v38_v10 }
  0xa5   :  { %v123_v14 = vpop.permute.xlu0 %122 }
  0xa6   :  { %216 = vpow2.f32 %v39_v12  ;;  %v124_v16 = vadd.s32 %v123_v14, %v121_v11 }
  0xa8   :  { %126 = vperm.xlu1 %212, %v124_v16  }
  0xac   :  { %142 = vperm.xlu1 %212, %v140_v17  }
  0xb0   :  { %v217_v18 = vpop.eup %216 }
  0xb1   :  { %v41_v19 = vpack.c.bf16 %v217_v18, %v217_v18 }
  0xb3   :  { %200 = vmatmul.mubr.msk.bf16.vlgmr.msra.gmra.mrb[0].mxu0 %vm34_vm0, %v41_v19 }
 0x127   :  { %v127_v23 = vpop.permute.xlu1 %126 }
 0x128   :  { %vm128_vm4 = vcmp.eq.s32.totalorder %v102_v22, %v127_v23 }
 0x12b   :  { %v143_v29 = vpop.permute.xlu1 %142 }
 0x12c   :  { %vm144_vm5 = vcmp.eq.s32.totalorder %v102_v22, %v143_v29 }
 0x186   :  { %v95_v24 = vpop.f32.mrb[0].mxu0 }
 0x187   :  { %v201_v25 = vpop.f32.mrb[1].mxu0  ;;  %v114_v26 = vsel %vm113_vm2, %v95_v24, 0.0  ;;  %v105_v27 = vsel %vm104_vm3, %v95_v24, 0.0  ;;  %v129_v31 = vsel %vm128_vm4, %v95_v24, 0.0  ;;  %v145_v32 = vsel %vm144_vm5, %v95_v24, 0.0 }
 0x188   :  { %115 = vadd.xlane.f32.xlu0 %v114_v26  ;;  %v98_v28 = vpop.f32.mrb[2].mxu0  ;;  %106 = vadd.xlane.f32.xlu1 %v105_v27 }
 0x189   :  { %v202_v30 = vpop.f32.mrb[3].mxu0 }
 0x18c   :  { %130 = vadd.xlane.f32.xlu1 %v129_v31 }
 0x190   :  { %146 = vadd.xlane.f32.xlu1 %v145_v32 }
 0x215   :  { %v107_v33 = vpop.xlane.xlu1 %106  ;;  %v116_v34 = vpop.xlane.xlu0 %115 }
 0x216   :  { %218 = vlog2.f32 %v107_v33 }
 0x217   :  { %220 = vlog2.f32 %v116_v34 }
 0x219   :  { %v131_v35 = vpop.xlane.xlu1 %130 }
 0x21a   :  { %222 = vlog2.f32 %v131_v35 }
 0x21d   :  { %v147_v36 = vpop.xlane.xlu1 %146 }
 0x21e   :  { %224 = vlog2.f32 %v147_v36 }
 0x220   :  { %v219_v37 = vpop.eup %218 }
 0x221   :  { %v221_v38 = vpop.eup %220  ;;  %v109_v40 = vmul.f32 0.6931472, %v219_v37 }
 0x222   :  { %v118_v41 = vmul.f32 0.6931472, %v221_v38 }
 0x224   :  { %v223_v39 = vpop.eup %222  ;;  %v119_v45 = vadd.f32 %v118_v41, %v109_v40 }
 0x225   :  { %v133_v42 = vmul.f32 0.6931472, %v223_v39 }
 0x227   :  { %v134_v43 = vmul.f32 -1.0, %v133_v42 }
 0x228   :  { %v225_v44 = vpop.eup %224 }
 0x229   :  { %v149_v46 = vmul.f32 0.6931472, %v225_v44  ;;  %v135_v48 = vadd.f32 %v134_v43, %v119_v45 }
 0x22b   :  { %v150_v47 = vmul.f32 -1.0, %v149_v46 }
 0x22d   :  { %v151_v49 = vadd.f32 %v150_v47, %v135_v48 }
 0x22f   :  { %v161_v50 = vsel %vm160_vm6, %v151_v49, 0.0 }
 0x230   :  { %162 = vadd.xlane.f32.xlu0 %v161_v50 }
 0x2bd   :  { %v163_v51 = vpop.xlane.xlu0 %162 }
 0x2be   :  { %v164_v52 = vrot.slane %v163_v51, 4 }
 0x2c0   :  { %v165_v53 = vadd.f32 %v164_v52, %v163_v51 }
 0x2c2   :  { %v166_v54 = vrot.slane %v165_v53, 2 }
 0x2c4   :  { %v167_v55 = vadd.f32 %v166_v54, %v165_v53 }
 0x2c6   :  { %v168_v56 = vrot.slane %v167_v55, 1 }
 0x2c8   :  { %v169_v57 = vadd.f32 %v168_v56, %v167_v55 }
 0x2ca   :  { %203 = vpush %v169_v57 }
 0x2fb   :  { %s204_s4 = spop %203 }
 0x2fc   :  { %v171_v58 = vstv %s204_s4 }
 0x2fd   :  { %173 = vst [vmem:[#allocation5] sm:$0xff] %v171_v58 }
 0x2fe   :  { %259 = shalt.err (!%p256_p12)
}
 0x2ff   :  { %s260_s8 = scalar_lea.hbm %s339_s3, 128 }
 0x300   :  { %p261_p13 = scmp.ne.s32.totalorder %s339_s3, %s260_s8  ;;  %p264_p0 = scmp.lt.u32.totalorder %s260_s8, %s339_s3 }
 0x302   :  { %p266_p1 = pnand %p264_p0, %p261_p13 }
 0x304   :  { %269 = shalt.err (!%p266_p1)
}
 0x305   :  { %183 = dma.vmem_to_hbm [thread:$0]  %s181_s2, 128, %s339_s3, [#allocation4]  }
 0x306   :  { %272 = dma.done.wait [#allocation4], 128  }
 0x307   :  { %273 = vsyncadd [#allocation4], 4294967168 }
 0x308   :  { %187 = vsyncpa [#allocation3], 1 }
 0x309   :  { %188 = vsyncpa [#allocation4], 1 }

</bundles_post_ra>
